<compile_context>
chip_gen: v7x
topology: tpu7x:2x2x1
jax: 0.10.0
libtpu: 0.0.40
codegen_flags: <defaults>
</compile_context>

<pallas_src>
import jax
import jax.numpy as jnp
from jax import lax
from jax.experimental import pallas as pl
from jax.experimental.pallas import tpu as pltpu


def _round_up(n, m):
    return ((n + m - 1) // m) * m


def critic_kernel(x_ref, w1_ref, b1_ref, w2_ref, b2_ref, w3_ref, b3_ref, o_ref):
    """One batch tile: x (TB, D) -> o (1, TB) (batch on the lane axis, lane-dense)."""
    x = x_ref[...]                                                   # (TB, D)

    # Layer 1 (MXU): (TB, D) @ (D, 64); f32 accumulation, bias + ReLU in f32 (VPU).
    h1 = jnp.dot(x, w1_ref[...], preferred_element_type=jnp.float32)
    h1 = jnp.maximum(h1 + b1_ref[...], 0.0)

    # Layer 2 (MXU): (TB, 64) @ (64, 32).
    h2 = jnp.dot(h1.astype(w2_ref.dtype), w2_ref[...],
                 preferred_element_type=jnp.float32)
    h2 = jnp.maximum(h2 + b2_ref[...], 0.0)                         # (TB, 32) f32

    # Layer 3 (32 -> 1): contract the 32 axis of h2 against the f32 w3 row,
    # producing the lane-dense (1, TB) output row directly (no (TB, 1)
    # intermediate and no transpose; the MXU is otherwise idle here).
    y = lax.dot_general(w3_ref[...], h2,
                        dimension_numbers=(((1,), (1,)), ((), ())),
                        preferred_element_type=jnp.float32)         # (1, TB)
    o_ref[...] = (y + b3_ref[...]).astype(o_ref.dtype)


def _choose_block_rows(batch, d, itemsize, max_block_rows, x_budget_bytes):
    """Largest lane-aligned batch tile whose double-buffered x block fits the
    VMEM budget, capped at ceil(B/2) so large batches still give >= 2 grid steps
    (v7x megacore).  Returns None for small batches (single full-array block)."""
    cap = (x_budget_bytes // (2 * d * itemsize)) // 128 * 128
    # NOTE: assumes a small MLP input dim; an enormous state_dim would need its
    # own feature-dim tiling plan.
    cap = max(128, min(cap, max_block_rows))
    if batch <= 256:
        return None
    return int(min(cap, _round_up(-(-batch // 2), 128)))


def critic_forward(x, params, *, max_block_rows=2048, x_budget_bytes=6 << 20):
    """Forward pass of Critic.  x: (B, state_dim).  Returns (B, 1) float32.

    bf16 MXU operands are used only when x already arrives as bf16 (halves the
    dominant HBM read); f32 inputs are streamed untouched.  Accumulation, bias
    adds, ReLUs and the 32->1 layer stay float32 on every TPU generation.
    """
    w1, b1, w2, b2, w3, b3 = params
    B, D = x.shape

    mxu_dtype = jnp.bfloat16 if x.dtype == jnp.bfloat16 else jnp.float32
    w1 = w1.astype(mxu_dtype)                         # tiny weights: cast cost is negligible
    w2 = w2.astype(mxu_dtype)
    w3_row = jnp.reshape(w3, (1, w3.shape[0])).astype(jnp.float32)   # f32 end-to-end
    b1 = b1.astype(jnp.float32)
    b2 = b2.astype(jnp.float32)
    b3 = b3.astype(jnp.float32)

    itemsize = jnp.dtype(x.dtype).itemsize
    tb = _choose_block_rows(B, D, itemsize, max_block_rows, x_budget_bytes)

    if tb is None:
        # Small batch: one full-array block (no padding, no partial-block masking).
        grid = (1,)
        x_spec = pl.BlockSpec((B, D), lambda i: (0, 0))
        out_spec = pl.BlockSpec((1, B), lambda i: (0, 0))
    else:
        # No wrapper-side jnp.pad: the last block may be partial.  Pallas clamps
        # the edge DMA (tail x rows hold unspecified data) and drops out-of-bounds
        # output lanes; every row's math is independent, so garbage stays confined
        # to tail lanes that are never stored into the real output.
        grid = (pl.cdiv(B, tb),)
        x_spec = pl.BlockSpec((tb, D), lambda i: (i, 0))
        out_spec = pl.BlockSpec((1, tb), lambda i: (0, i))

    def resident(a):  # full block + constant index map -> DMA'd once, VMEM-resident
        return pl.BlockSpec(a.shape, lambda i: (0,) * a.ndim)

    out = pl.pallas_call(
        critic_kernel,
        out_shape=jax.ShapeDtypeStruct((1, B), jnp.float32),
        grid=grid,
        in_specs=[
            x_spec,
            resident(w1), resident(b1),
            resident(w2), resident(b2),
            resident(w3_row), resident(b3),
        ],
        out_specs=out_spec,
        compiler_params=pltpu.CompilerParams(
            dimension_semantics=("parallel",),        # megacore-shardable batch axis
            # Headroom over v5e's 16 MiB default scoped limit, comfortably under
            # v7x's 64 MiB physical VMEM; the tile formula keeps actual use to
            # <= ~6 MiB of double-buffered x plus tiny resident weights.
            vmem_limit_bytes=32 * 1024 * 1024,
        ),
    )(x, w1, b1, w2, b2, w3_row, b3)

    return jnp.reshape(out, (B, 1))


def init_critic_params(key, state_dim):
    """Deterministic init matching PyTorch nn.Linear defaults:
    U(-1/sqrt(fan_in), 1/sqrt(fan_in)) for both weight and bias."""
    dims = [(state_dim, 64), (64, 32), (32, 1)]
    params = []
    for (fan_in, fan_out) in dims:
        key, kw, kb = jax.random.split(key, 3)
        bound = 1.0 / jnp.sqrt(float(fan_in))
        w = jax.random.uniform(kw, (fan_in, fan_out), jnp.float32, -bound, bound)
        b = jax.random.uniform(kb, (1, fan_out), jnp.float32, -bound, bound)
        params += [w, b]
    return tuple(params)


def critic_reference(x, params):
    w1, b1, w2, b2, w3, b3 = params
    h1 = jnp.maximum(x @ w1 + b1, 0.0)
    h2 = jnp.maximum(h1 @ w2 + b2, 0.0)
    return h2 @ w3 + b3


if __name__ == "__main__":
    key = jax.random.PRNGKey(0)
    state_dim = 32

    k_x, k_p = jax.random.split(key)
    params = init_critic_params(k_p, state_dim)

    # Small batch: single full-array block path.
    x_small = jax.random.normal(k_x, (8, state_dim), jnp.float32)
    out_small = jax.block_until_ready(critic_forward(x_small, params))
    ref_small = critic_reference(x_small, params)
    assert out_small.shape == (8, 1), out_small.shape
    assert jnp.allclose(out_small, ref_small, atol=1e-5, rtol=1e-5), "small-batch f32 mismatch"

    # Non-multiple batch: 2-step grid with a partial last block (no wrapper pad copy).
    batch = 300
    x = jax.random.normal(k_x, (batch, state_dim), jnp.float32)
    out = jax.block_until_ready(critic_forward(x, params))
    ref = critic_reference(x, params)
    assert out.shape == (batch, 1), out.shape
    assert jnp.allclose(out, ref, atol=1e-5, rtol=1e-5), "f32 mismatch vs reference"

    # bf16 path is used only because x already arrives as bf16 (halves the x DMA);
    # accumulation / bias / ReLU / layer 3 stay f32.
    x_bf16 = x.astype(jnp.bfloat16)
    out_bf16 = jax.block_until_ready(critic_forward(x_bf16, params))
    ref_bf16 = critic_reference(x_bf16.astype(jnp.float32), params)
    assert out_bf16.shape == (batch, 1), out_bf16.shape
    assert jnp.allclose(out_bf16, ref_bf16, atol=1e-1, rtol=1e-1), "bf16 mismatch vs reference"

    print("KERNEL_OK")
</pallas_src>

<mosaic_0001>
module attributes {stable_mosaic.version = 11 : i64} {
  func.func @critic_kernel(%arg0: i32, %arg1: memref<8x32xf32, #tpu.memory_space<vmem>>, %arg2: memref<32x64xf32, #tpu.memory_space<vmem>>, %arg3: memref<1x64xf32, #tpu.memory_space<vmem>>, %arg4: memref<64x32xf32, #tpu.memory_space<vmem>>, %arg5: memref<1x32xf32, #tpu.memory_space<vmem>>, %arg6: memref<1x32xf32, #tpu.memory_space<vmem>>, %arg7: memref<1x1xf32, #tpu.memory_space<vmem>>, %arg8: memref<1x8xf32, #tpu.memory_space<vmem>>) attributes {dimension_semantics = [#tpu.dimension_semantics<parallel>], iteration_bounds = array<i64: 1>, scalar_prefetch = 0 : i64, scratch_operands = 0 : i64, tpu.core_type = #tpu.core_type<tc>, window_params = [{pipeline_mode = #tpu.pipeline_mode<synchronous>, transform_indices = @transform_0, window_bounds = array<i64: 8, 32>}, {pipeline_mode = #tpu.pipeline_mode<synchronous>, transform_indices = @transform_1, window_bounds = array<i64: 32, 64>}, {pipeline_mode = #tpu.pipeline_mode<synchronous>, transform_indices = @transform_2, window_bounds = array<i64: 1, 64>}, {pipeline_mode = #tpu.pipeline_mode<synchronous>, transform_indices = @transform_3, window_bounds = array<i64: 64, 32>}, {pipeline_mode = #tpu.pipeline_mode<synchronous>, transform_indices = @transform_4, window_bounds = array<i64: 1, 32>}, {pipeline_mode = #tpu.pipeline_mode<synchronous>, transform_indices = @transform_5, window_bounds = array<i64: 1, 32>}, {pipeline_mode = #tpu.pipeline_mode<synchronous>, transform_indices = @transform_6, window_bounds = array<i64: 1, 1>}, {pipeline_mode = #tpu.pipeline_mode<synchronous>, transform_indices = @transform_7, window_bounds = array<i64: 1, 8>}]} {
    %c0 = arith.constant 0 : index
    %c0_0 = arith.constant 0 : index
    %0 = vector.load %arg1[%c0, %c0_0] : memref<8x32xf32, #tpu.memory_space<vmem>>, vector<8x32xf32>
    %c0_1 = arith.constant 0 : index
    %c0_2 = arith.constant 0 : index
    %1 = vector.load %arg2[%c0_1, %c0_2] : memref<32x64xf32, #tpu.memory_space<vmem>>, vector<32x64xf32>
    %cst = arith.constant dense<0.000000e+00> : vector<8x64xf32>
    %2 = tpu.matmul %0, %1, %cst {dimension_numbers = #tpu.dot_dimension_numbers<[1], [0], [0], [1], [0, 0, 1, 1], [], []>} : vector<8x32xf32>, vector<32x64xf32>, vector<8x64xf32> -> vector<8x64xf32>
    %c0_3 = arith.constant 0 : index
    %c0_4 = arith.constant 0 : index
    %3 = vector.load %arg3[%c0_3, %c0_4] : memref<1x64xf32, #tpu.memory_space<vmem>>, vector<1x64xf32>
    %4 = vector.broadcast %3 : vector<1x64xf32> to vector<8x64xf32>
    %5 = arith.addf %2, %4 : vector<8x64xf32>
    %cst_5 = arith.constant 0.000000e+00 : f32
    %6 = vector.broadcast %cst_5 : f32 to vector<8x64xf32>
    %7 = arith.maximumf %5, %6 : vector<8x64xf32>
    %c0_6 = arith.constant 0 : index
    %c0_7 = arith.constant 0 : index
    %8 = vector.load %arg4[%c0_6, %c0_7] : memref<64x32xf32, #tpu.memory_space<vmem>>, vector<64x32xf32>
    %cst_8 = arith.constant dense<0.000000e+00> : vector<8x32xf32>
    %9 = tpu.matmul %7, %8, %cst_8 {dimension_numbers = #tpu.dot_dimension_numbers<[1], [0], [0], [1], [0, 0, 1, 1], [], []>} : vector<8x64xf32>, vector<64x32xf32>, vector<8x32xf32> -> vector<8x32xf32>
    %c0_9 = arith.constant 0 : index
    %c0_10 = arith.constant 0 : index
    %10 = vector.load %arg5[%c0_9, %c0_10] : memref<1x32xf32, #tpu.memory_space<vmem>>, vector<1x32xf32>
    %11 = vector.broadcast %10 : vector<1x32xf32> to vector<8x32xf32>
    %12 = arith.addf %9, %11 : vector<8x32xf32>
    %cst_11 = arith.constant 0.000000e+00 : f32
    %13 = vector.broadcast %cst_11 : f32 to vector<8x32xf32>
    %14 = arith.maximumf %12, %13 : vector<8x32xf32>
    %c0_12 = arith.constant 0 : index
    %c0_13 = arith.constant 0 : index
    %15 = vector.load %arg6[%c0_12, %c0_13] : memref<1x32xf32, #tpu.memory_space<vmem>>, vector<1x32xf32>
    %cst_14 = arith.constant dense<0.000000e+00> : vector<1x8xf32>
    %16 = tpu.matmul %15, %14, %cst_14 {dimension_numbers = #tpu.dot_dimension_numbers<[1], [1], [0], [0], [0, 0, 1, 0], [], []>} : vector<1x32xf32>, vector<8x32xf32>, vector<1x8xf32> -> vector<1x8xf32>
    %c0_15 = arith.constant 0 : index
    %c0_16 = arith.constant 0 : index
    %17 = vector.load %arg7[%c0_15, %c0_16] : memref<1x1xf32, #tpu.memory_space<vmem>>, vector<1x1xf32>
    %18 = vector.broadcast %17 : vector<1x1xf32> to vector<1x8xf32>
    %19 = arith.addf %16, %18 : vector<1x8xf32>
    %c0_17 = arith.constant 0 : index
    %c0_18 = arith.constant 0 : index
    %20 = vector.load %arg8[%c0_17, %c0_18] : memref<1x8xf32, #tpu.memory_space<vmem>>, vector<1x8xf32>
    tpu.vector_store %arg8[%c0_17, %c0_18], %19 {strides = array<i32>} : memref<1x8xf32, #tpu.memory_space<vmem>>, vector<1x8xf32>,
    return
  }
  func.func @transform_0(%arg0: i32) -> (i32, i32) {
    %c0_i32 = arith.constant 0 : i32
    %c0_i32_0 = arith.constant 0 : i32
    %c0_i32_1 = arith.constant 0 : i32
    return %c0_i32, %c0_i32_0 : i32, i32
  }
  func.func @transform_1(%arg0: i32) -> (i32, i32) {
    %c0_i32 = arith.constant 0 : i32
    %c0_i32_0 = arith.constant 0 : i32
    %c0_i32_1 = arith.constant 0 : i32
    return %c0_i32, %c0_i32_0 : i32, i32
  }
  func.func @transform_2(%arg0: i32) -> (i32, i32) {
    %c0_i32 = arith.constant 0 : i32
    %c0_i32_0 = arith.constant 0 : i32
    %c0_i32_1 = arith.constant 0 : i32
    return %c0_i32, %c0_i32_0 : i32, i32
  }
  func.func @transform_3(%arg0: i32) -> (i32, i32) {
    %c0_i32 = arith.constant 0 : i32
    %c0_i32_0 = arith.constant 0 : i32
    %c0_i32_1 = arith.constant 0 : i32
    return %c0_i32, %c0_i32_0 : i32, i32
  }
  func.func @transform_4(%arg0: i32) -> (i32, i32) {
    %c0_i32 = arith.constant 0 : i32
    %c0_i32_0 = arith.constant 0 : i32
    %c0_i32_1 = arith.constant 0 : i32
    return %c0_i32, %c0_i32_0 : i32, i32
  }
  func.func @transform_5(%arg0: i32) -> (i32, i32) {
    %c0_i32 = arith.constant 0 : i32
    %c0_i32_0 = arith.constant 0 : i32
    %c0_i32_1 = arith.constant 0 : i32
    return %c0_i32, %c0_i32_0 : i32, i32
  }
  func.func @transform_6(%arg0: i32) -> (i32, i32) {
    %c0_i32 = arith.constant 0 : i32
    %c0_i32_0 = arith.constant 0 : i32
    %c0_i32_1 = arith.constant 0 : i32
    return %c0_i32, %c0_i32_0 : i32, i32
  }
  func.func @transform_7(%arg0: i32) -> (i32, i32) {
    %c0_i32 = arith.constant 0 : i32
    %c0_i32_0 = arith.constant 0 : i32
    %c0_i32_1 = arith.constant 0 : i32
    return %c0_i32, %c0_i32_0 : i32, i32
  }
}

</mosaic_0001>

<bundles_post_ra>
// kernel: tpu_custom_call.1
= control target key start
LH: loop header
LB: loop body
LE: loop exit
PB: predicated region body
PF: predicated region fallthrough
CT: control target
= control target key end

     0   :  { %s528_s0 = inlined_call_operand.vmem [shape: f32[8,32], index: 0, kind: input, shape index: {}]   ;;  %s529_s1 = inlined_call_operand.vmem [shape: f32[32,64], index: 1, kind: input, shape index: {}]   ;;  %s530_s2 = inlined_call_operand.vmem [shape: f32[1,64], index: 2, kind: input, shape index: {}]   ;;  %s531_s3 = inlined_call_operand.vmem [shape: f32[64,32], index: 3, kind: input, shape index: {}]   ;;  %s532_s4 = inlined_call_operand.vmem [shape: f32[1,32], index: 4, kind: input, shape index: {}]   ;;  %s533_s5 = inlined_call_operand.vmem [shape: f32[1,32], index: 5, kind: input, shape index: {}]   ;;  %s534_s6 = inlined_call_operand.<no memory space> [shape: f32[1,1], index: 6, kind: input, shape index: {}]   ;;  %s535_s7 = inlined_call_operand.hbm [shape: f32[1,8], index: 7, kind: output, shape index: {}]  }
   0x1   :  { %v12_v0 = vstv %s534_s6 }
   0x2   :  { %13 = vst [vmem:[#allocation2] sm:$0x1] %v12_v0 }
   0x3   :  { %v30_v1 = vld [vmem:[%s529_s1] sm:$0xff]  ;;  %v31_v2 = vld [vmem:[%s529_s1 + $0x8] sm:$0xff]  ;;  %v32_v3 = vld [vmem:[%s529_s1 + $0x10] sm:$0xff]  ;;  %v414_v4 = vmov 0.0|0.0   ;;  %vm415_vm0 = vmmov 0   ;;  %v416_v7 = vmov 0.0  }
   0x4   :  { %366 = vmatprep.subr.bf16.mxu0 %v414_v4  ;;  %v367_v5 = vpack.c.bf16 %v31_v2, %v30_v1  ;;  %v33_v6 = vld [vmem:[%s529_s1 + $0x18] sm:$0xff]  ;;  %339 = vmatprep.mubr.msk.f32.mxu0 %vm415_vm0, %v416_v7  ;;  %v116_v8 = vld [vmem:[%s531_s3] sm:$0xff]  ;;  %v117_v9 = vld [vmem:[%s531_s3 + $0x8] sm:$0xff] }
   0x5   :  { %372 = vmatprep.subr.bf16.mxu1 %v414_v4  ;;  %v118_v10 = vld [vmem:[%s531_s3 + $0x10] sm:$0xff]  ;;  %v119_v11 = vld [vmem:[%s531_s3 + $0x18] sm:$0xff]  ;;  %358 = vmatprep.mubr.msk.f32.mxu1 %vm415_vm0, %v416_v7  ;;  %v370_v12 = vpack.c.bf16 %v33_v6, %v32_v3  ;;  %v373_v13 = vpack.c.bf16 %v117_v9, %v116_v8 }
   0x6   :  { %368 = vmatpush3.bf16.msra.mxu0 %v367_v5 }
   0x7   :  { %369 = vmatprep.subr.bf16.mxu0 %v414_v4 }
   0x8   :  { %14 = vsyncpa [#allocation4], 0  ;;  %374 = vmatpush3.bf16.msra.mxu1 %v373_v13  ;;  %v376_v14 = vpack.c.bf16 %v119_v11, %v118_v10  ;;  %v120_v15 = vld [vmem:[%s531_s3 + $0x20] sm:$0xff]  ;;  %v121_v16 = vld [vmem:[%s531_s3 + $0x28] sm:$0xff]  ;;  %vm41_vm1 = vcmask 261120   ;;  %vm131_vm2 = vcmask 523264   ;;  %v213_v35 = vlaneseq }
   0x9   :  { %375 = vmatprep.subr.bf16.mxu1 %v414_v4  ;;  %v29_v17 = vld [vmem:[%s528_s0] sm:$0xff]  ;;  %v379_v18 = vpack.c.bf16 %v121_v16, %v120_v15  ;;  %v122_v19 = vld [vmem:[%s531_s3 + $0x30] sm:$0xff]  ;;  %v123_v20 = vld [vmem:[%s531_s3 + $0x38] sm:$0xff]  ;;  %v417_v28 = vmov 0   ;;  %s418_s30 = smov [#allocation3]   ;;  %vm293_vm3 = vcmask 57344  }
   0xa   :  { %371 = vmatpush3.bf16.msra.mxu0 %v370_v12  ;;  %v382_v21 = vpack.c.bf16 %v123_v20, %v122_v19  ;;  %v309_v22 = vld [vmem:[%s530_s2] ss:$0 sm:$0xff]  ;;  %389 = vset.pattern.permute.xlu0 %v417_v28  ;;  %v214_v36 = vshrl.u32 %v213_v35, 7  ;;  %s301_s8 = sshll.u32 %s418_s30, 4  ;;  %s302_s8 = int_to_ptr.vmem [resolvable:$true] %s301_s8 }
   0xb   :  { %361 = vmatprep.subr.mxu0 %v416_v7  ;;  %v207_v27 = vld [vmem:[#allocation2] sm:$0x1]  ;;  %s394_s9 = scalar_lea.vmem %s302_s8, 32  ;;  %p395_p1 = scmp.lt.s32.totalorder %s302_s8, %s302_s8 }
   0xc   :  { %377 = vmatpush3.bf16.msra.mxu1 %v376_v14  ;;  %210 = vperm.xlu0 %389, %v207_v27   ;;  %v311_v29 = vld [vmem:[%s532_s4] ss:$0 sm:$0xff]  ;;  %v215_v37 = vsub.s32 0, %v214_v36  ;;  %s390_s4 = scalar_lea.vmem %s302_s8, 16 }
   0xd   :  { %340 = vmatmul.mubr.msk.f32.vlgmr.msra.gmra.mrb[0].mxu0 %vm41_vm1, %v29_v17  ;;  %378 = vmatprep.subr.bf16.mxu1 %v414_v4  ;;  %v206_v34 = vld [vmem:[%s533_s5] sm:$0x1]  ;;  %p391_p0 = scmp.ne.s32.totalorder %s302_s8, %s390_s4  ;;  %p396_p2 = scmp.lt.s32.totalorder %s394_s9, %s390_s4 }
   0xe   :  { %363 = vmatprep.mubr.msk.f32.mxu0 %vm415_vm0, %v416_v7 }
   0xf   :  { %p397_p3 = por %p396_p2, %p395_p1 }
  0x10   :  { %380 = vmatpush3.bf16.msra.mxu1 %v379_v18 }
  0x11   :  { %381 = vmatprep.subr.bf16.mxu1 %v414_v4  ;;  %p398_p4 = pnand %p397_p3, %p391_p0 }
  0x14   :  { %383 = vmatpush3.bf16.msra.mxu1 %v382_v21 }
  0x8b   :  { %v211_v38 = vpop.permute.xlu0 %210 }
  0x8c   :  { %v216_v39 = vrot.slane %v211_v38, %v215_v37 }
  0xe0   :  { %v111_v23 = vpop.f32.mrb[0].mxu0 }
  0xe1   :  { %v112_v24 = vadd.f32 %v309_v22, %v111_v23  ;;  %v341_v25 = vpop.f32.mrb[1].mxu0 }
  0xe3   :  { %v115_v26 = vmax.f32 %v112_v24, 0.0 }
  0xe5   :  { %359 = vmatmul.mubr.msk.f32.vlgmr.msra.gmra.mrb[0].mxu1 %vm131_vm2, %v115_v26 }
 0x1b8   :  { %v201_v30 = vpop.f32.mrb[0].mxu1 }
 0x1b9   :  { %v202_v31 = vadd.f32 %v311_v29, %v201_v30  ;;  %v360_v32 = vpop.f32.mrb[1].mxu1 }
 0x1bb   :  { %v205_v33 = vmax.f32 %v202_v31, 0.0 }
 0x1bd   :  { %362 = vmatpush3.xpose.msk.msra.mxu0 %vm41_vm1, %v205_v33 }
 0x1c0   :  { %364 = vmatmul.mubr.msk.f32.vlgmr.msra.gmra.mrb[2].mxu0 %vm41_vm1, %v206_v34 }
 0x293   :  { %v289_v40 = vpop.f32.mrb[2].mxu0 }
 0x294   :  { %v290_v41 = vadd.f32 %v289_v40, %v216_v39  ;;  %v365_v42 = vpop.f32.mrb[3].mxu0 }
 0x296   :  { %294 = vst.msk [vmem:[#allocation3] sm:$0x1] %vm293_vm3, %v290_v41 }
 0x297   :  { %401 = shalt.err (!%p398_p4)
}
 0x298   :  { %s402_s6 = scalar_lea.hbm %s535_s7, 16 }
 0x299   :  { %p403_p5 = scmp.ne.s32.totalorder %s535_s7, %s402_s6  ;;  %p406_p6 = scmp.lt.u32.totalorder %s402_s6, %s535_s7 }
 0x29b   :  { %p408_p7 = pnand %p406_p6, %p403_p5 }
 0x29d   :  { %411 = shalt.err (!%p408_p7)
}
 0x29e   :  { %304 = dma.vmem_to_hbm [thread:$0]  %s302_s8, 16, %s535_s7, [#allocation4]  }
 0x29f   :  { %412 = dma.done.wait [#allocation4], 16  }
 0x2a0   :  { %413 = vsyncadd [#allocation4], 4294967280 }
 0x2a1   :  { %308 = vsyncpa [#allocation4], 1 }

</bundles_post_ra>
